<compile_context>
chip_gen: v7x
topology: tpu7x:2x2x1
jax: 0.10.0
libtpu: 0.0.40
codegen_flags: <defaults>
</compile_context>

<pallas_src>
import functools

import jax
import jax.numpy as jnp
from jax.experimental import pallas as pl
from jax.experimental.pallas import tpu as pltpu


def _round_up(x, m):
    return ((x + m - 1) // m) * m


def _cdiv(a, b):
    return -(-a // b)


_MAX_TB = 4096  # per-step VMEM stays well under every generation's scoped limit


def _choose_tb(B):
    """Pick the batch tile.

    Tiny batches: a single grid step.  Otherwise: prefer >= 2 grid steps so
    the "parallel" batch axis shards across v7x's two TensorCores, pick the
    tile (capped at _MAX_TB) that minimizes padded work with a small per-step
    overhead penalty (~0.35 us/step ~= a few hundred rows of work here).
    """
    B8 = max(8, _round_up(B, 8))
    if B8 <= 256:
        return B8
    half = _round_up(_cdiv(B8, 2), 8)                  # exactly-2-step tile
    cands = {tb for tb in (128, 256, 512, 1024, 2048, 4096, half)
             if tb <= _MAX_TB and _cdiv(B8, tb) >= 2}
    def cost(tb):
        steps = _cdiv(B8, tb)
        return steps * tb + 512 * steps                # padded rows + step overhead
    return min(cands, key=cost)


def _qnet_kernel(state_ref, action_ref, w1_ref, w2_ref, w3_ref, out_ref, *,
                 k_in, two_h, use_bf16):
    """Fused twin-Q MLP on one (TB, *) batch tile.

    Packed weight layouts (bias stored as the last row, 8-aligned offsets):
      w1_ref: (k_in + 1, 2H)   rows [0:ni_pad)           -> state part of [w1||w4]
                               rows [ni_pad:ni_pad+na_pad)-> action part (zero-padded)
                               row  [k_in]                -> [b1 || b4]
      w2_ref: (2H + 1, 2H)     block-diag(w2, w5); last row = [b2 || b5]
      w3_ref: (2H + 1, 128)    col 0 = [w3;0], col 1 = [0;w6], rest zero;
                               last row = [b3, b6, 0...]
    """
    cdt = jnp.bfloat16 if use_bf16 else jnp.float32

    # ---- layer 1: one MXU pass over the lane-concatenated input ----
    xu = jnp.concatenate([state_ref[...], action_ref[...]], axis=1)   # (TB, k_in)
    w1 = w1_ref[...]
    h = jnp.dot(xu.astype(cdt), w1[:k_in, :].astype(cdt),
                preferred_element_type=jnp.float32)
    h = jnp.maximum(h + w1[k_in:k_in + 1, :], 0.0)                    # (TB, 2H)

    # ---- layer 2: block-diag(w2, w5) while 2H fits one MXU tile width ----
    w2 = w2_ref[...]
    if two_h <= 128:   # static trace-time branch; zero blocks are free here
        hh = jnp.dot(h.astype(cdt), w2[:two_h, :].astype(cdt),
                     preferred_element_type=jnp.float32)
    else:              # fall back to two per-head dots (avoid 2x MXU waste)
        H = two_h // 2
        ha = jnp.dot(h[:, :H].astype(cdt), w2[:H, :H].astype(cdt),
                     preferred_element_type=jnp.float32)
        hb = jnp.dot(h[:, H:].astype(cdt), w2[H:two_h, H:].astype(cdt),
                     preferred_element_type=jnp.float32)
        hh = jnp.concatenate([ha, hb], axis=1)
    h = jnp.maximum(hh + w2[two_h:two_h + 1, :], 0.0)

    # ---- layer 3: lane-dense (TB, 128) head; q1 in lane 0, q2 in lane 1 ----
    w3 = w3_ref[...]
    out_ref[...] = (jnp.dot(h.astype(cdt), w3[:two_h, :].astype(cdt),
                            preferred_element_type=jnp.float32)
                    + w3[two_h:two_h + 1, :])


def _qnetwork_forward(state, action, packed, *, use_bf16_matmul=False):
    """Twin-Q forward. Returns (q1, q2), each (B, 1) float32."""
    B, ni = state.shape
    na = action.shape[1]
    ni_pad = _round_up(ni, 8)
    na_pad = _round_up(na, 8)
    k_in = ni_pad + na_pad
    two_h = packed["w2p"].shape[1]          # 2 * hidden_dim
    H = two_h // 2

    TB = _choose_tb(B)
    B_pad = _round_up(B, TB)
    if B_pad != B or ni_pad != ni:
        state = jnp.pad(state, ((0, B_pad - B), (0, ni_pad - ni)))
    if B_pad != B or na_pad != na:
        action = jnp.pad(action, ((0, B_pad - B), (0, na_pad - na)))
    grid = (B_pad // TB,)

    kernel = functools.partial(_qnet_kernel, k_in=k_in, two_h=two_h,
                               use_bf16=use_bf16_matmul)

    # Honest cost hints: no zero-block FLOPs, resident weights counted once.
    flops = 2 * B_pad * ((ni + na) * two_h + 2 * H * H + two_h)
    bytes_accessed = 4 * (B_pad * (ni_pad + na_pad + 128)
                          + packed["w1p"].size + packed["w2p"].size
                          + packed["w3p"].size)

    out = pl.pallas_call(
        kernel,
        out_shape=jax.ShapeDtypeStruct((B_pad, 128), jnp.float32),
        grid_spec=pltpu.PrefetchScalarGridSpec(
            num_scalar_prefetch=0,
            grid=grid,
            in_specs=[
                pl.BlockSpec((TB, ni_pad), lambda i: (i, 0)),
                pl.BlockSpec((TB, na_pad), lambda i: (i, 0)),
                # Weights: constant index_map -> resident in VMEM across steps.
                pl.BlockSpec((k_in + 1, two_h), lambda i: (0, 0)),
                pl.BlockSpec((two_h + 1, two_h), lambda i: (0, 0)),
                pl.BlockSpec((two_h + 1, 128), lambda i: (0, 0)),
            ],
            out_specs=pl.BlockSpec((TB, 128), lambda i: (i, 0)),
        ),
        compiler_params=pltpu.CompilerParams(
            dimension_semantics=("parallel",),
            vmem_limit_bytes=32 * 1024 * 1024),
        cost_estimate=pl.CostEstimate(
            flops=flops, transcendentals=0, bytes_accessed=bytes_accessed),
    )(state, action, packed["w1p"], packed["w2p"], packed["w3p"])

    return out[:B, 0:1], out[:B, 1:2]


qnetwork_forward = jax.jit(_qnetwork_forward, static_argnames=("use_bf16_matmul",))


def xavier_uniform(key, in_features, out_features, gain=1.0):
    # Matches torch.nn.init.xavier_uniform_ (gain=1) on a (out, in) weight,
    # returned in the transposed (in, out) layout used by the kernel.
    bound = gain * jnp.sqrt(6.0 / (in_features + out_features))
    return jax.random.uniform(key, (in_features, out_features),
                              dtype=jnp.float32, minval=-bound, maxval=bound)


def init_qnetwork_params(key, num_inputs, num_actions, hidden_dim):
    in_dim = num_inputs + num_actions
    keys = jax.random.split(key, 6)
    return {
        "w1": xavier_uniform(keys[0], in_dim, hidden_dim),
        "b1": jnp.zeros((1, hidden_dim), jnp.float32),
        "w2": xavier_uniform(keys[1], hidden_dim, hidden_dim),
        "b2": jnp.zeros((1, hidden_dim), jnp.float32),
        "w3": xavier_uniform(keys[2], hidden_dim, 1),
        "b3": jnp.zeros((1, 1), jnp.float32),
        "w4": xavier_uniform(keys[3], in_dim, hidden_dim),
        "b4": jnp.zeros((1, hidden_dim), jnp.float32),
        "w5": xavier_uniform(keys[4], hidden_dim, hidden_dim),
        "b5": jnp.zeros((1, hidden_dim), jnp.float32),
        "w6": xavier_uniform(keys[5], hidden_dim, 1),
        "b6": jnp.zeros((1, 1), jnp.float32),
    }


def pack_qnetwork_params(p, num_inputs, num_actions):
    """Pack the 12 logical tensors into 3 fused weight arrays (done once)."""
    ni, na = num_inputs, num_actions
    ni_pad, na_pad = _round_up(ni, 8), _round_up(na, 8)
    H = p["w2"].shape[0]
    H2 = 2 * H

    # Layer 1: (ni_pad + na_pad + 1, 2H) -- [w1||w4] with 8-aligned state /
    # action row blocks (zero-padded) and the bias row [b1||b4] last.
    w1p = jnp.zeros((ni_pad + na_pad + 1, H2), jnp.float32)
    w1p = w1p.at[:ni, :H].set(p["w1"][:ni])
    w1p = w1p.at[:ni, H:].set(p["w4"][:ni])
    w1p = w1p.at[ni_pad:ni_pad + na, :H].set(p["w1"][ni:])
    w1p = w1p.at[ni_pad:ni_pad + na, H:].set(p["w4"][ni:])
    w1p = w1p.at[-1, :H].set(p["b1"][0])
    w1p = w1p.at[-1, H:].set(p["b4"][0])

    # Layer 2: (2H + 1, 2H) -- block-diag(w2, w5) with bias row [b2||b5].
    w2p = jnp.zeros((H2 + 1, H2), jnp.float32)
    w2p = w2p.at[:H, :H].set(p["w2"])
    w2p = w2p.at[H:H2, H:].set(p["w5"])
    w2p = w2p.at[-1, :H].set(p["b2"][0])
    w2p = w2p.at[-1, H:].set(p["b5"][0])

    # Layer 3: (2H + 1, 128) lane-dense head -- q1 in lane 0, q2 in lane 1.
    w3p = jnp.zeros((H2 + 1, 128), jnp.float32)
    w3p = w3p.at[:H, 0].set(p["w3"][:, 0])
    w3p = w3p.at[H:H2, 1].set(p["w6"][:, 0])
    w3p = w3p.at[-1, 0].set(p["b3"][0, 0])
    w3p = w3p.at[-1, 1].set(p["b6"][0, 0])

    return {"w1p": w1p, "w2p": w2p, "w3p": w3p}


def _reference_forward(state, action, p):
    xu = jnp.concatenate([state, action], axis=1)
    h1 = jax.nn.relu(xu @ p["w1"] + p["b1"])
    h1 = jax.nn.relu(h1 @ p["w2"] + p["b2"])
    q1 = h1 @ p["w3"] + p["b3"]
    h2 = jax.nn.relu(xu @ p["w4"] + p["b4"])
    h2 = jax.nn.relu(h2 @ p["w5"] + p["b5"])
    q2 = h2 @ p["w6"] + p["b6"]
    return q1, q2


if __name__ == "__main__":
    num_inputs = 8
    num_actions = 4
    hidden_dim = 32

    key = jax.random.PRNGKey(0)
    k_state, k_action, k_params, k_state2, k_action2 = jax.random.split(key, 5)

    params = init_qnetwork_params(k_params, num_inputs, num_actions, hidden_dim)
    packed = pack_qnetwork_params(params, num_inputs, num_actions)

    # --- small batch: single grid step, strict f32 check ---
    batch = 8
    state = jax.random.normal(k_state, (batch, num_inputs), dtype=jnp.float32)
    action = jax.random.normal(k_action, (batch, num_actions), dtype=jnp.float32)
    q1, q2 = qnetwork_forward(state, action, packed)
    jax.block_until_ready((q1, q2))
    r1, r2 = _reference_forward(state, action, params)
    assert q1.shape == (batch, 1) and q2.shape == (batch, 1)
    assert jnp.allclose(q1, r1, atol=1e-5) and jnp.allclose(q2, r2, atol=1e-5)

    # --- larger batch: exercises batch padding + >=2 grid steps (dual-TC path) ---
    batch2 = 268
    state2 = jax.random.normal(k_state2, (batch2, num_inputs), dtype=jnp.float32)
    action2 = jax.random.normal(k_action2, (batch2, num_actions), dtype=jnp.float32)
    q1b, q2b = qnetwork_forward(state2, action2, packed)
    jax.block_until_ready((q1b, q2b))
    r1b, r2b = _reference_forward(state2, action2, params)
    assert jnp.allclose(q1b, r1b, atol=1e-5) and jnp.allclose(q2b, r2b, atol=1e-5)

    # --- optional bf16 MXU-operand path (v6e/v7x); looser tolerance ---
    q1c, q2c = qnetwork_forward(state2, action2, packed, use_bf16_matmul=True)
    jax.block_until_ready((q1c, q2c))
    assert jnp.allclose(q1c, r1b, atol=5e-2, rtol=5e-2)
    assert jnp.allclose(q2c, r2b, atol=5e-2, rtol=5e-2)

    # TODO(synk): checkpoint save/load and count_parameters are host-side
    # utilities with no kernel equivalent; omitted.
    print("KERNEL_OK")
</pallas_src>

<mosaic_0001>
module attributes {stable_mosaic.version = 11 : i64} {
  func.func @_qnet_kernel(%arg0: i32, %arg1: memref<8x8xf32, #tpu.memory_space<vmem>>, %arg2: memref<8x8xf32, #tpu.memory_space<vmem>>, %arg3: memref<17x64xf32, #tpu.memory_space<vmem>>, %arg4: memref<65x64xf32, #tpu.memory_space<vmem>>, %arg5: memref<65x128xf32, #tpu.memory_space<vmem>>, %arg6: memref<8x128xf32, #tpu.memory_space<vmem>>) attributes {dimension_semantics = [#tpu.dimension_semantics<parallel>], iteration_bounds = array<i64: 1>, scalar_prefetch = 0 : i64, scratch_operands = 0 : i64, tpu.core_type = #tpu.core_type<tc>, window_params = [{transform_indices = @transform_0, window_bounds = array<i64: 8, 8>}, {transform_indices = @transform_1, window_bounds = array<i64: 8, 8>}, {pipeline_mode = #tpu.pipeline_mode<synchronous>, transform_indices = @transform_2, window_bounds = array<i64: 17, 64>}, {pipeline_mode = #tpu.pipeline_mode<synchronous>, transform_indices = @transform_3, window_bounds = array<i64: 65, 64>}, {pipeline_mode = #tpu.pipeline_mode<synchronous>, transform_indices = @transform_4, window_bounds = array<i64: 65, 128>}, {transform_indices = @transform_5, window_bounds = array<i64: 8, 128>}]} {
    %c0 = arith.constant 0 : index
    %c0_0 = arith.constant 0 : index
    %0 = vector.load %arg1[%c0, %c0_0] : memref<8x8xf32, #tpu.memory_space<vmem>>, vector<8x8xf32>
    %c0_1 = arith.constant 0 : index
    %c0_2 = arith.constant 0 : index
    %1 = vector.load %arg2[%c0_1, %c0_2] : memref<8x8xf32, #tpu.memory_space<vmem>>, vector<8x8xf32>
    %2 = tpu.concatenate %0, %1 in 1 : vector<8x8xf32>, vector<8x8xf32> -> vector<8x16xf32>
    %c0_3 = arith.constant 0 : index
    %c0_4 = arith.constant 0 : index
    %3 = vector.load %arg3[%c0_3, %c0_4] : memref<17x64xf32, #tpu.memory_space<vmem>>, vector<17x64xf32>
    %4 = vector.extract_strided_slice %3 {offsets = [0, 0], sizes = [16, 64], strides = [1, 1]} : vector<17x64xf32> to vector<16x64xf32>
    %cst = arith.constant dense<0.000000e+00> : vector<8x64xf32>
    %5 = tpu.matmul %2, %4, %cst {dimension_numbers = #tpu.dot_dimension_numbers<[1], [0], [0], [1], [0, 0, 1, 1], [], []>} : vector<8x16xf32>, vector<16x64xf32>, vector<8x64xf32> -> vector<8x64xf32>
    %6 = vector.extract_strided_slice %3 {offsets = [16, 0], sizes = [1, 64], strides = [1, 1]} : vector<17x64xf32> to vector<1x64xf32>
    %7 = vector.broadcast %6 : vector<1x64xf32> to vector<8x64xf32>
    %8 = arith.addf %5, %7 : vector<8x64xf32>
    %cst_5 = arith.constant 0.000000e+00 : f32
    %9 = vector.broadcast %cst_5 : f32 to vector<8x64xf32>
    %10 = arith.maximumf %8, %9 : vector<8x64xf32>
    %c0_6 = arith.constant 0 : index
    %c0_7 = arith.constant 0 : index
    %11 = vector.load %arg4[%c0_6, %c0_7] : memref<65x64xf32, #tpu.memory_space<vmem>>, vector<65x64xf32>
    %12 = vector.extract_strided_slice %11 {offsets = [0, 0], sizes = [64, 64], strides = [1, 1]} : vector<65x64xf32> to vector<64x64xf32>
    %cst_8 = arith.constant dense<0.000000e+00> : vector<8x64xf32>
    %13 = tpu.matmul %10, %12, %cst_8 {dimension_numbers = #tpu.dot_dimension_numbers<[1], [0], [0], [1], [0, 0, 1, 1], [], []>} : vector<8x64xf32>, vector<64x64xf32>, vector<8x64xf32> -> vector<8x64xf32>
    %14 = vector.extract_strided_slice %11 {offsets = [64, 0], sizes = [1, 64], strides = [1, 1]} : vector<65x64xf32> to vector<1x64xf32>
    %15 = vector.broadcast %14 : vector<1x64xf32> to vector<8x64xf32>
    %16 = arith.addf %13, %15 : vector<8x64xf32>
    %cst_9 = arith.constant 0.000000e+00 : f32
    %17 = vector.broadcast %cst_9 : f32 to vector<8x64xf32>
    %18 = arith.maximumf %16, %17 : vector<8x64xf32>
    %c0_10 = arith.constant 0 : index
    %c0_11 = arith.constant 0 : index
    %19 = vector.load %arg5[%c0_10, %c0_11] : memref<65x128xf32, #tpu.memory_space<vmem>>, vector<65x128xf32>
    %20 = vector.extract_strided_slice %19 {offsets = [0, 0], sizes = [64, 128], strides = [1, 1]} : vector<65x128xf32> to vector<64x128xf32>
    %cst_12 = arith.constant dense<0.000000e+00> : vector<8x128xf32>
    %21 = tpu.matmul %18, %20, %cst_12 {dimension_numbers = #tpu.dot_dimension_numbers<[1], [0], [0], [1], [0, 0, 1, 1], [], []>} : vector<8x64xf32>, vector<64x128xf32>, vector<8x128xf32> -> vector<8x128xf32>
    %22 = vector.extract_strided_slice %19 {offsets = [64, 0], sizes = [1, 128], strides = [1, 1]} : vector<65x128xf32> to vector<1x128xf32>
    %23 = vector.broadcast %22 : vector<1x128xf32> to vector<8x128xf32>
    %24 = arith.addf %21, %23 : vector<8x128xf32>
    %c0_13 = arith.constant 0 : index
    %c0_14 = arith.constant 0 : index
    %25 = vector.load %arg6[%c0_13, %c0_14] : memref<8x128xf32, #tpu.memory_space<vmem>>, vector<8x128xf32>
    tpu.vector_store %arg6[%c0_13, %c0_14], %24 {strides = array<i32>} : memref<8x128xf32, #tpu.memory_space<vmem>>, vector<8x128xf32>,
    return
  }
  func.func @transform_0(%arg0: i32) -> (i32, i32) {
    %c0_i32 = arith.constant 0 : i32
    %c0_i32_0 = arith.constant 0 : i32
    return %arg0, %c0_i32 : i32, i32
  }
  func.func @transform_1(%arg0: i32) -> (i32, i32) {
    %c0_i32 = arith.constant 0 : i32
    %c0_i32_0 = arith.constant 0 : i32
    return %arg0, %c0_i32 : i32, i32
  }
  func.func @transform_2(%arg0: i32) -> (i32, i32) {
    %c0_i32 = arith.constant 0 : i32
    %c0_i32_0 = arith.constant 0 : i32
    %c0_i32_1 = arith.constant 0 : i32
    return %c0_i32, %c0_i32_0 : i32, i32
  }
  func.func @transform_3(%arg0: i32) -> (i32, i32) {
    %c0_i32 = arith.constant 0 : i32
    %c0_i32_0 = arith.constant 0 : i32
    %c0_i32_1 = arith.constant 0 : i32
    return %c0_i32, %c0_i32_0 : i32, i32
  }
  func.func @transform_4(%arg0: i32) -> (i32, i32) {
    %c0_i32 = arith.constant 0 : i32
    %c0_i32_0 = arith.constant 0 : i32
    %c0_i32_1 = arith.constant 0 : i32
    return %c0_i32, %c0_i32_0 : i32, i32
  }
  func.func @transform_5(%arg0: i32) -> (i32, i32) {
    %c0_i32 = arith.constant 0 : i32
    %c0_i32_0 = arith.constant 0 : i32
    return %arg0, %c0_i32 : i32, i32
  }
}

</mosaic_0001>

<bundles_post_ra>
// kernel: _qnetwork_forward.1
= control target key start
LH: loop header
LB: loop body
LE: loop exit
PB: predicated region body
PF: predicated region fallthrough
CT: control target
= control target key end

     0   :  { %v392_v1 = vmov 0.0|0.0   ;;  %vm393_vm0 = vmmov 0   ;;  %v394_v4 = vmov 0.0   ;;  %s395_s24 = smov 8   ;;  %vm26_vm1 = vcmask 64512   ;;  %s501_s1 = inlined_call_operand.vmem [shape: f32[8,8], index: 1, kind: input, shape index: {}]   ;;  %s502_s2 = inlined_call_operand.vmem [shape: f32[17,64], index: 2, kind: input, shape index: {}]   ;;  %s503_s3 = inlined_call_operand.vmem [shape: f32[65,64], index: 3, kind: input, shape index: {}]   ;;  %s504_s0 = inlined_call_operand.vmem [shape: f32[8,8], index: 0, kind: input, shape index: {}]   ;;  %s505_s4 = inlined_call_operand.vmem [shape: f32[65,128], index: 4, kind: input, shape index: {}]   ;;  %s506_s5 = inlined_call_operand.vmem [shape: f32[8,128], index: 5, kind: output, shape index: {}]  }
   0x1   :  { %v21_v0 = vld [vmem:[%s501_s1] sm:$0xff]  ;;  %361 = vmatprep.subr.bf16.mxu0 %v392_v1  ;;  %v29_v3 = vld [vmem:[%s502_s2 + $0x8] sm:$0xff]  ;;  %320 = vmatprep.mubr.msk.f32.mxu0 %vm393_vm0, %v394_v4  ;;  %v112_v9 = vld [vmem:[%s503_s3 + $0x10] sm:$0xff]  ;;  %vm35_vm2 = vcmask 130048   ;;  %vm123_vm3 = vcmask 523264  }
   0x2   :  { %v28_v2 = vld [vmem:[%s502_s2] sm:$0xff]  ;;  %23 = vrot.lane.b32.xlu0 %v21_v0, %s395_s24  ;;  %364 = vmatprep.subr.bf16.mxu1 %v392_v1  ;;  %v111_v7 = vld [vmem:[%s503_s3 + $0x8] sm:$0xff]  ;;  %v113_v10 = vld [vmem:[%s503_s3 + $0x18] sm:$0xff] }
   0x3   :  { %v362_v5 = vpack.c.bf16 %v29_v3, %v28_v2  ;;  %v110_v6 = vld [vmem:[%s503_s3] sm:$0xff]  ;;  %339 = vmatprep.mubr.msk.f32.mxu1 %vm393_vm0, %v394_v4  ;;  %v368_v11 = vpack.c.bf16 %v113_v10, %v112_v9  ;;  %v115_v13 = vld [vmem:[%s503_s3 + $0x28] sm:$0xff]  ;;  %v116_v18 = vld [vmem:[%s503_s3 + $0x30] sm:$0xff] }
   0x4   :  { %v365_v8 = vpack.c.bf16 %v111_v7, %v110_v6  ;;  %v114_v12 = vld [vmem:[%s503_s3 + $0x20] sm:$0xff]  ;;  %v117_v19 = vld [vmem:[%s503_s3 + $0x38] sm:$0xff]  ;;  %v199_v22 = vld [vmem:[%s505_s4 + $0x8] sm:$0xff] }
   0x5   :  { %363 = vmatpush3.bf16.msra.mxu0 %v362_v5  ;;  %v371_v14 = vpack.c.bf16 %v115_v13, %v114_v12  ;;  %v20_v15 = vld [vmem:[%s504_s0] sm:$0xff]  ;;  %v374_v20 = vpack.c.bf16 %v117_v19, %v116_v18  ;;  %v200_v23 = vld [vmem:[%s505_s4 + $0x10] sm:$0xff]  ;;  %v201_v25 = vld [vmem:[%s505_s4 + $0x18] sm:$0xff] }
   0x6   :  { %366 = vmatpush3.bf16.msra.mxu1 %v365_v8  ;;  %376 = vmatprep.subr.bf16.mxu0 %v392_v1  ;;  %v198_v21 = vld [vmem:[%s505_s4] sm:$0xff]  ;;  %v380_v26 = vpack.c.bf16 %v201_v25, %v200_v23  ;;  %v203_v28 = vld [vmem:[%s505_s4 + $0x28] sm:$0xff]  ;;  %v289_v30 = vld [vmem:[%s502_s2 + $0x10] ss:$0 sm:$0xff] }
   0x7   :  { %367 = vmatprep.subr.bf16.mxu1 %v392_v1  ;;  %v377_v24 = vpack.c.bf16 %v199_v22, %v198_v21  ;;  %v202_v27 = vld [vmem:[%s505_s4 + $0x20] sm:$0xff]  ;;  %v204_v35 = vld [vmem:[%s505_s4 + $0x30] sm:$0xff]  ;;  %v205_v36 = vld [vmem:[%s505_s4 + $0x38] sm:$0xff] }
   0x8   :  { %v383_v29 = vpack.c.bf16 %v203_v28, %v202_v27  ;;  %v386_v37 = vpack.c.bf16 %v205_v36, %v204_v35  ;;  %v291_v38 = vld [vmem:[%s503_s3 + $0x40] ss:$0 sm:$0xff] }
   0x9   :  { %v293_v43 = vld [vmem:[%s505_s4 + $0x40] ss:$0 sm:$0xff] }
   0xa   :  { %369 = vmatpush3.bf16.msra.mxu1 %v368_v11 }
   0xb   :  { %370 = vmatprep.subr.bf16.mxu1 %v392_v1 }
   0xe   :  { %372 = vmatpush3.bf16.msra.mxu1 %v371_v14 }
   0xf   :  { %373 = vmatprep.subr.bf16.mxu1 %v392_v1 }
  0x12   :  { %375 = vmatpush3.bf16.msra.mxu1 %v374_v20 }
  0x74   :  { %v24_v16 = vpop.permute.xlu0 %23 }
  0x75   :  { %v27_v17 = vsel %vm26_vm1, %v20_v15, %v24_v16 }
  0x76   :  { %321 = vmatmul.mubr.msk.f32.vlgmr.msra.gmra.mrb[0].mxu0 %vm35_vm2, %v27_v17 }
  0x77   :  { %358 = vmatprep.mubr.msk.f32.mxu0 %vm393_vm0, %v394_v4  ;;  %378 = vmatpush3.bf16.msra.mxu0 %v377_v24 }
  0x78   :  { %379 = vmatprep.subr.bf16.mxu0 %v392_v1 }
  0x7b   :  { %381 = vmatpush3.bf16.msra.mxu0 %v380_v26 }
  0x7c   :  { %382 = vmatprep.subr.bf16.mxu0 %v392_v1 }
  0x7f   :  { %384 = vmatpush3.bf16.msra.mxu0 %v383_v29 }
  0x80   :  { %385 = vmatprep.subr.bf16.mxu0 %v392_v1 }
  0x83   :  { %387 = vmatpush3.bf16.msra.mxu0 %v386_v37 }
 0x149   :  { %v105_v31 = vpop.f32.mrb[0].mxu0 }
 0x14a   :  { %v106_v32 = vadd.f32 %v289_v30, %v105_v31  ;;  %v322_v33 = vpop.f32.mrb[1].mxu0 }
 0x14c   :  { %v109_v34 = vmax.f32 %v106_v32, 0.0 }
 0x14e   :  { %340 = vmatmul.mubr.msk.f32.vlgmr.msra.gmra.mrb[0].mxu1 %vm123_vm3, %v109_v34 }
 0x221   :  { %v193_v39 = vpop.f32.mrb[0].mxu1 }
 0x222   :  { %v194_v40 = vadd.f32 %v291_v38, %v193_v39  ;;  %v341_v41 = vpop.f32.mrb[1].mxu1 }
 0x224   :  { %v197_v42 = vmax.f32 %v194_v40, 0.0 }
 0x226   :  { %359 = vmatmul.mubr.msk.f32.vlgmr.msra.gmra.mrb[2].mxu0 %vm123_vm3, %v197_v42 }
 0x2f9   :  { %v280_v44 = vpop.f32.mrb[2].mxu0 }
 0x2fa   :  { %v281_v45 = vadd.f32 %v293_v43, %v280_v44  ;;  %v360_v46 = vpop.f32.mrb[3].mxu0 }
 0x2fc   :  { %284 = vst [vmem:[%s506_s5] sm:$0xff] %v281_v45 }

</bundles_post_ra>
